<compile_context>
chip_gen: v7x
topology: tpu7x:2x2x1
jax: 0.10.0
libtpu: 0.0.40
codegen_flags: <defaults>
</compile_context>

<pallas_src>
import functools

import jax
import jax.numpy as jnp
from jax.experimental import pallas as pl
from jax.experimental.pallas import tpu as pltpu

hwgq_steps = {1: 0.799, 2: 0.538, 3: 0.3217, 4: 0.185}


def _mix_quant_activ_kernel(sw_ref, posonly_ref, x_ref, o_ref, *, bits):
    """One channel-block: x_ref/o_ref are (N, CB, HW); compute in f32."""
    x = x_ref[...].astype(jnp.float32)                        # (N, CB, HW)

    has_pc = any(8 <= b < 32 for b in bits)
    if has_pc:
        posonly = posonly_ref[0] > 0
        # Per-channel stats over (batch, spatial) = axes (0, 2); exact because every
        # grid block holds the full (N, HW) extent of its channels.
        min_c = jnp.min(jnp.min(x, axis=2, keepdims=True), axis=0, keepdims=True)
        max_c = jnp.max(jnp.max(x, axis=2, keepdims=True), axis=0, keepdims=True)
        range_c = jnp.where(posonly,
                            max_c - min_c,
                            2.0 * jnp.maximum(jnp.abs(max_c), jnp.abs(min_c)))
        off = jnp.where(posonly, 0.0, 0.5)                     # shared scalar select

    acc = None
    for i, bit in enumerate(bits):
        w = sw_ref[i]                                          # scalar from SMEM
        if bit >= 32:
            # MixQuantActiv appends None for bit >= 32 -> pure identity branch.
            contrib = w * x
        elif bit < 8:
            # HWGQ: clamp to [0, step*(2^bit-1)], snap to the step grid; fold w*step.
            step = float(hwgq_steps[bit])
            clip_thr = step * float(2 ** bit - 1)
            contrib = jnp.round(jnp.clip(x, 0.0, clip_thr) * (1.0 / step)) * (w * step)
        else:
            # QuantPerChannel: unified posonly/symmetric formula; select happens on
            # per-channel / scalar quantities only, never on the full tile.
            max_int = float(2 ** bit - 1)
            lo = jnp.where(posonly, 0.0, -(0.5 * max_int - 0.5))
            hi = jnp.where(posonly, max_int, 0.5 * max_int - 0.5)
            scale_c = range_c * (1.0 / max_int)                # (1, CB, 1)
            inv_scale_c = 1.0 / scale_c
            q = jnp.clip(jnp.round(x * inv_scale_c + off) - off, lo, hi)
            contrib = q * (w * scale_c)
        acc = contrib if acc is None else acc + contrib

    o_ref[...] = acc.astype(o_ref.dtype)                       # wide, unmasked stores


def _vmem_capacity_bytes():
    try:
        return int(pltpu.get_tpu_info().vmem_capacity_bytes)
    except Exception:
        return 64 * 1024 * 1024           # conservative default (v7x per-core VMEM)


def _pick_channel_block(C, N, HW, itemsize, budget_bytes):
    """Channel-block size for the (N, cb, HW) block.

    cb is a multiple of the sublane granularity (f32: 8, bf16: 16) or == C, the
    double-buffered (in + out) working set stays under `budget_bytes`, and we aim
    for >= 4 grid steps when C allows (>= 2 per TensorCore on v7x megacore).
    """
    sub = max(8, 32 // itemsize)
    if C <= sub:
        return C                          # full channel dim in one block (always legal)
    per_ch = 4 * N * HW * itemsize        # (in + out) block, double-buffered
    max_cb = max(sub, (budget_bytes // per_ch) // sub * sub)
    target = (((C + 3) // 4) + sub - 1) // sub * sub           # ~C/4, rounded up to sub
    cb = max(sub, min(max_cb, target, (C // sub) * sub))
    # Prefer a block that divides C (no ragged tail); otherwise accept a masked tail
    # block -- all per-channel work is independent, so padded tail channels are inert.
    d = cb
    while d > sub and C % d:
        d -= sub
    return d if C % d == 0 else cb


def mix_quant_activ_forward(x, sw, bits, posonly=None):
    """x: (N, C, H, W), sw: (len(bits),)  ->  (N, C, H, W) in x.dtype.

    `posonly`: optional static hint for QuantPerChannel branches.  None (default)
    reproduces the PyTorch runtime check  min(x) >= -0.05  with one small XLA reduce.
    """
    N, C, H, W = x.shape
    HW = H * W
    x_k = x.reshape(N, C, HW)             # free reshape, NCHW preserved (no transpose)
    sw = sw.astype(jnp.float32)

    if any(8 <= b < 32 for b in bits):
        if posonly is None:
            posonly_arr = (jnp.min(x) >= -0.05).astype(jnp.int32).reshape(1)
        else:
            posonly_arr = jnp.full((1,), int(bool(posonly)), jnp.int32)
    else:
        posonly_arr = jnp.zeros((1,), jnp.int32)

    itemsize = jnp.dtype(x.dtype).itemsize
    vmem_cap = _vmem_capacity_bytes()
    budget = min(vmem_cap // 4, 32 * 1024 * 1024)
    cb = _pick_channel_block(C, N, HW, itemsize, budget)
    grid = (pl.cdiv(C, cb),)

    kernel = functools.partial(_mix_quant_activ_kernel, bits=tuple(bits))
    out_k = pl.pallas_call(
        kernel,
        out_shape=jax.ShapeDtypeStruct((N, C, HW), x.dtype),
        grid=grid,
        in_specs=[
            pl.BlockSpec(memory_space=pltpu.MemorySpace.SMEM),     # sw (nb,) f32
            pl.BlockSpec(memory_space=pltpu.MemorySpace.SMEM),     # posonly (1,) i32
            pl.BlockSpec((N, cb, HW), lambda i: (0, i, 0)),        # x channel block
        ],
        out_specs=pl.BlockSpec((N, cb, HW), lambda i: (0, i, 0)),
        compiler_params=pltpu.CompilerParams(
            dimension_semantics=("parallel",),
            vmem_limit_bytes=int(min(vmem_cap, 2 * budget)),
        ),
    )(sw, posonly_arr, x_k)

    return out_k.reshape(N, C, H, W)


def _mix_quant_activ_ref(x, sw, bits):
    """Pure-JAX reference mirroring the PyTorch forward (for the correctness check)."""
    x = x.astype(jnp.float32)
    acc = jnp.zeros_like(x)
    posonly = jnp.min(x) >= -0.05
    for i, bit in enumerate(bits):
        if bit >= 32:
            y = x
        elif bit < 8:
            step = float(hwgq_steps[bit])
            clip_thr = step * float(2 ** bit - 1)
            y = jnp.clip(x, 0.0, clip_thr)
            y = jnp.round(y * (1.0 / step)) * step
        else:
            max_int = float(2 ** bit - 1)
            min_v = jnp.min(x, axis=(0, 2, 3), keepdims=True)
            max_v = jnp.max(x, axis=(0, 2, 3), keepdims=True)
            rng = jnp.where(posonly, max_v - min_v,
                            2.0 * jnp.maximum(jnp.abs(max_v), jnp.abs(min_v)))
            scale = rng * (1.0 / max_int)
            inv_scale = 1.0 / scale
            y_pos = jnp.clip(jnp.round(x * inv_scale) * scale, 0.0, max_int * scale)
            thr_sym = (0.5 * max_int - 0.5) * scale
            y_sym = (jnp.round(x * inv_scale + 0.5) - 0.5) * scale
            y_sym = jnp.clip(y_sym, -thr_sym, thr_sym)
            y = jnp.where(posonly, y_pos, y_sym)
        acc = acc + sw[i] * y
    return acc


if __name__ == "__main__":
    key = jax.random.PRNGKey(0)
    k_x, k_w = jax.random.split(key)

    N, C, H, W = 2, 4, 16, 16
    bits = (2, 4, 8, 32)   # HWGQ(2), HWGQ(4), QuantPerChannel(8), identity(>=32)

    x = jax.random.normal(k_x, (N, C, H, W), jnp.float32)
    sw = jax.nn.softmax(jax.random.normal(k_w, (len(bits),), jnp.float32))

    out = mix_quant_activ_forward(x, sw, bits)
    out = jax.block_until_ready(out)

    ref = _mix_quant_activ_ref(x, sw, bits)
    assert out.shape == (N, C, H, W), out.shape
    assert bool(jnp.all(jnp.isfinite(out)))
    assert bool(jnp.allclose(out, ref, atol=1e-4, rtol=1e-4)), \
        float(jnp.max(jnp.abs(out - ref)))
    print("KERNEL_OK")
</pallas_src>

<mosaic_0001>
module attributes {stable_mosaic.version = 11 : i64} {
  func.func @_mix_quant_activ_kernel(%arg0: i32, %arg1: memref<4xf32, #tpu.memory_space<smem>>, %arg2: memref<1xi32, #tpu.memory_space<smem>>, %arg3: memref<2x4x256xf32, #tpu.memory_space<vmem>>, %arg4: memref<2x4x256xf32, #tpu.memory_space<vmem>>) attributes {dimension_semantics = [#tpu.dimension_semantics<parallel>], iteration_bounds = array<i64: 1>, scalar_prefetch = 0 : i64, scratch_operands = 0 : i64, tpu.core_type = #tpu.core_type<tc>, window_params = [{transform_indices = @transform_0, window_bounds = array<i64: 4>}, {transform_indices = @transform_1, window_bounds = array<i64: 1>}, {transform_indices = @transform_2, window_bounds = array<i64: 2, 4, 256>}, {transform_indices = @transform_3, window_bounds = array<i64: 2, 4, 256>}]} {
    %c0 = arith.constant 0 : index
    %c0_0 = arith.constant 0 : index
    %c0_1 = arith.constant 0 : index
    %0 = vector.load %arg3[%c0, %c0_0, %c0_1] : memref<2x4x256xf32, #tpu.memory_space<vmem>>, vector<2x4x256xf32>
    %c0_2 = arith.constant 0 : index
    %1 = memref.load %arg2[%c0_2] : memref<1xi32, #tpu.memory_space<smem>>
    %c0_i32 = arith.constant 0 : i32
    %2 = arith.cmpi sgt, %1, %c0_i32 : i32
    %cst = arith.constant dense<0x7F800000> : vector<2x4xf32>
    %3 = vector.multi_reduction <minimumf>, %0, %cst [2] : vector<2x4x256xf32> to vector<2x4xf32>
    %4 = vector.shape_cast %3 : vector<2x4xf32> to vector<2x4x1xf32>
    %cst_3 = arith.constant dense<0x7F800000> : vector<4x1xf32>
    %5 = vector.multi_reduction <minimumf>, %4, %cst_3 [0] : vector<2x4x1xf32> to vector<4x1xf32>
    %6 = vector.shape_cast %5 : vector<4x1xf32> to vector<1x4x1xf32>
    %cst_4 = arith.constant dense<0xFF800000> : vector<2x4xf32>
    %7 = vector.multi_reduction <maximumf>, %0, %cst_4 [2] : vector<2x4x256xf32> to vector<2x4xf32>
    %8 = vector.shape_cast %7 : vector<2x4xf32> to vector<2x4x1xf32>
    %cst_5 = arith.constant dense<0xFF800000> : vector<4x1xf32>
    %9 = vector.multi_reduction <maximumf>, %8, %cst_5 [0] : vector<2x4x1xf32> to vector<4x1xf32>
    %10 = vector.shape_cast %9 : vector<4x1xf32> to vector<1x4x1xf32>
    %11 = arith.subf %10, %6 : vector<1x4x1xf32>
    %12 = math.absf %10 : vector<1x4x1xf32>
    %13 = math.absf %6 : vector<1x4x1xf32>
    %14 = arith.maximumf %12, %13 : vector<1x4x1xf32>
    %cst_6 = arith.constant 2.000000e+00 : f32
    %15 = vector.broadcast %cst_6 : f32 to vector<1x4x1xf32>
    %16 = arith.mulf %15, %14 : vector<1x4x1xf32>
    %17 = arith.select %2, %11, %16 : vector<1x4x1xf32>
    %cst_7 = arith.constant 0.000000e+00 : f32
    %cst_8 = arith.constant 5.000000e-01 : f32
    %18 = arith.select %2, %cst_7, %cst_8 : f32
    %c0_9 = arith.constant 0 : index
    %19 = memref.load %arg1[%c0_9] : memref<4xf32, #tpu.memory_space<smem>>
    %cst_10 = arith.constant 0.000000e+00 : f32
    %cst_11 = arith.constant 1.614000e+00 : f32
    %20 = vector.broadcast %cst_10 : f32 to vector<2x4x256xf32>
    %21 = arith.maximumf %20, %0 : vector<2x4x256xf32>
    %22 = vector.broadcast %cst_11 : f32 to vector<2x4x256xf32>
    %23 = arith.minimumf %22, %21 : vector<2x4x256xf32>
    %cst_12 = arith.constant 1.85873604 : f32
    %24 = vector.broadcast %cst_12 : f32 to vector<2x4x256xf32>
    %25 = arith.mulf %23, %24 : vector<2x4x256xf32>
    %26 = math.roundeven %25 : vector<2x4x256xf32>
    %cst_13 = arith.constant 5.380000e-01 : f32
    %27 = arith.mulf %19, %cst_13 : f32
    %28 = vector.broadcast %27 : f32 to vector<2x4x256xf32>
    %29 = arith.mulf %26, %28 : vector<2x4x256xf32>
    %c1 = arith.constant 1 : index
    %30 = memref.load %arg1[%c1] : memref<4xf32, #tpu.memory_space<smem>>
    %cst_14 = arith.constant 0.000000e+00 : f32
    %cst_15 = arith.constant 2.775000e+00 : f32
    %31 = vector.broadcast %cst_14 : f32 to vector<2x4x256xf32>
    %32 = arith.maximumf %31, %0 : vector<2x4x256xf32>
    %33 = vector.broadcast %cst_15 : f32 to vector<2x4x256xf32>
    %34 = arith.minimumf %33, %32 : vector<2x4x256xf32>
    %cst_16 = arith.constant 5.40540552 : f32
    %35 = vector.broadcast %cst_16 : f32 to vector<2x4x256xf32>
    %36 = arith.mulf %34, %35 : vector<2x4x256xf32>
    %37 = math.roundeven %36 : vector<2x4x256xf32>
    %cst_17 = arith.constant 1.850000e-01 : f32
    %38 = arith.mulf %30, %cst_17 : f32
    %39 = vector.broadcast %38 : f32 to vector<2x4x256xf32>
    %40 = arith.mulf %37, %39 : vector<2x4x256xf32>
    %41 = arith.addf %29, %40 : vector<2x4x256xf32>
    %c2 = arith.constant 2 : index
    %42 = memref.load %arg1[%c2] : memref<4xf32, #tpu.memory_space<smem>>
    %cst_18 = arith.constant 0.000000e+00 : f32
    %cst_19 = arith.constant -1.270000e+02 : f32
    %43 = arith.select %2, %cst_18, %cst_19 : f32
    %cst_20 = arith.constant 2.550000e+02 : f32
    %cst_21 = arith.constant 1.270000e+02 : f32
    %44 = arith.select %2, %cst_20, %cst_21 : f32
    %cst_22 = arith.constant 0.00392156886 : f32
    %45 = vector.broadcast %cst_22 : f32 to vector<1x4x1xf32>
    %46 = arith.mulf %17, %45 : vector<1x4x1xf32>
    %cst_23 = arith.constant 1.000000e+00 : f32
    %47 = vector.broadcast %cst_23 : f32 to vector<1x4x1xf32>
    %48 = arith.divf %47, %46 : vector<1x4x1xf32>
    %49 = vector.broadcast %48 : vector<1x4x1xf32> to vector<2x4x256xf32>
    %50 = arith.mulf %0, %49 : vector<2x4x256xf32>
    %51 = vector.broadcast %18 : f32 to vector<2x4x256xf32>
    %52 = arith.addf %50, %51 : vector<2x4x256xf32>
    %53 = math.roundeven %52 : vector<2x4x256xf32>
    %54 = vector.broadcast %18 : f32 to vector<2x4x256xf32>
    %55 = arith.subf %53, %54 : vector<2x4x256xf32>
    %56 = vector.broadcast %43 : f32 to vector<2x4x256xf32>
    %57 = arith.maximumf %56, %55 : vector<2x4x256xf32>
    %58 = vector.broadcast %44 : f32 to vector<2x4x256xf32>
    %59 = arith.minimumf %58, %57 : vector<2x4x256xf32>
    %60 = vector.broadcast %42 : f32 to vector<1x4x1xf32>
    %61 = arith.mulf %60, %46 : vector<1x4x1xf32>
    %62 = vector.broadcast %61 : vector<1x4x1xf32> to vector<2x4x256xf32>
    %63 = arith.mulf %59, %62 : vector<2x4x256xf32>
    %64 = arith.addf %41, %63 : vector<2x4x256xf32>
    %c3 = arith.constant 3 : index
    %65 = memref.load %arg1[%c3] : memref<4xf32, #tpu.memory_space<smem>>
    %66 = vector.broadcast %65 : f32 to vector<2x4x256xf32>
    %67 = arith.mulf %66, %0 : vector<2x4x256xf32>
    %68 = arith.addf %64, %67 : vector<2x4x256xf32>
    %c0_24 = arith.constant 0 : index
    %c0_25 = arith.constant 0 : index
    %c0_26 = arith.constant 0 : index
    %69 = vector.load %arg4[%c0_24, %c0_25, %c0_26] : memref<2x4x256xf32, #tpu.memory_space<vmem>>, vector<2x4x256xf32>
    tpu.vector_store %arg4[%c0_24, %c0_25, %c0_26], %68 {strides = array<i32>} : memref<2x4x256xf32, #tpu.memory_space<vmem>>, vector<2x4x256xf32>,
    return
  }
  func.func @transform_0(%arg0: i32) -> i32 {
    %c0_i32 = arith.constant 0 : i32
    %c0_i32_0 = arith.constant 0 : i32
    return %c0_i32 : i32
  }
  func.func @transform_1(%arg0: i32) -> i32 {
    %c0_i32 = arith.constant 0 : i32
    %c0_i32_0 = arith.constant 0 : i32
    return %c0_i32 : i32
  }
  func.func @transform_2(%arg0: i32) -> (i32, i32, i32) {
    %c0_i32 = arith.constant 0 : i32
    %c0_i32_0 = arith.constant 0 : i32
    %c0_i32_1 = arith.constant 0 : i32
    return %c0_i32, %arg0, %c0_i32_0 : i32, i32, i32
  }
  func.func @transform_3(%arg0: i32) -> (i32, i32, i32) {
    %c0_i32 = arith.constant 0 : i32
    %c0_i32_0 = arith.constant 0 : i32
    %c0_i32_1 = arith.constant 0 : i32
    return %c0_i32, %arg0, %c0_i32_0 : i32, i32, i32
  }
}

</mosaic_0001>

<bundles_post_ra>
// kernel: tpu_custom_call.1
= control target key start
LH: loop header
LB: loop body
LE: loop exit
PB: predicated region body
PF: predicated region fallthrough
CT: control target
= control target key end

     0   :  { %9 = vsyncpa [#allocation6], 0  ;;  %s379_s0 = inlined_call_operand.vmem [shape: f32[4], index: 0, kind: input, shape index: {}]   ;;  %s380_s1 = inlined_call_operand.<no memory space> [shape: s32[1], index: 1, kind: input, shape index: {}]   ;;  %s381_s2 = inlined_call_operand.hbm [shape: f32[2,4,256], index: 2, kind: input, shape index: {}]   ;;  %s382_s3 = inlined_call_operand.hbm [shape: f32[2,4,256], index: 3, kind: output, shape index: {}]  }
   0x1   :  { %10 = vsyncpa [#allocation4], 0 }
   0x2   :  { %11 = vsyncpa [#allocation5], 0  ;;  %s18_s14 = sshll.u32 %s379_s0, 4  ;;  %s19_s14 = int_to_ptr.vmem [resolvable:$true] %s18_s14 }
   0x3   :  { %s206_s15 = scalar_lea.vmem %s19_s14, 16  ;;  %p211_p1 = scmp.lt.s32.totalorder %s19_s14, %s19_s14 }
   0x4   :  { %p207_p0 = scmp.ne.s32.totalorder %s19_s14, %s206_s15  ;;  %p212_p2 = scmp.lt.s32.totalorder %s206_s15, %s206_s15 }
   0x6   :  { %p213_p3 = por %p212_p2, %p211_p1 }
   0x8   :  { %p214_p4 = pnand %p213_p3, %p207_p0 }
   0xa   :  { %217 = shalt.err (!%p214_p4)
}
   0xb   :  { %s268_s16 = smov [#allocation3]   ;;  %s269_s17 = smov [#allocation7]  }
   0xc   :  { %21 = dma.vmem_to_smem %s19_s14, 16, %s268_s16, [#allocation6]  }
   0xd   :  { %s29_s18 = sshll.u32 %s269_s17, 4  ;;  %s218_s21 = scalar_lea.hbm %s381_s2, 256  ;;  %s30_s18 = int_to_ptr.vmem [resolvable:$true] %s29_s18 }
   0xe   :  { %p219_p5 = scmp.ne.s32.totalorder %s381_s2, %s218_s21  ;;  %p222_p6 = scmp.lt.u32.totalorder %s218_s21, %s381_s2 }
  0x10   :  { %p224_p7 = pnand %p222_p6, %p219_p5 }
  0x12   :  { %227 = shalt.err (!%p224_p7)
}
  0x13   :  { %s228_s25 = scalar_lea.vmem %s30_s18, 256  ;;  %p233_p9 = scmp.lt.s32.totalorder %s30_s18, %s30_s18 }
  0x14   :  { %p229_p8 = scmp.ne.s32.totalorder %s30_s18, %s228_s25  ;;  %p234_p10 = scmp.lt.s32.totalorder %s228_s25, %s228_s25 }
  0x16   :  { %p235_p11 = por %p234_p10, %p233_p9 }
  0x18   :  { %p236_p12 = pnand %p235_p11, %p229_p8 }
  0x1a   :  { %239 = shalt.err (!%p236_p12)
}
  0x1b   :  { %s270_s26 = smov 128   ;;  %s271_s27 = smov 8  }
  0x1c   :  { %35 = dma.hbm_to_vmem [thread:$0]  %s381_s2, 256, %s30_s18, [#allocation4], %s270_s26, %s270_s26, %s271_s27  }
  0x1d   :  { %262 = dma.done.wait [#allocation6], 16  }
  0x1e   :  { %263 = vsyncadd [#allocation6], 4294967280 }
  0x1f   :  { %264 = dma.done.wait [#allocation4], 256  }
  0x20   :  { %265 = vsyncadd [#allocation4], 4294967040 }
  0x21   :  { %42 = sfence }
  0x22   :  { %v312_v0 = vld [vmem:[#allocation7] sm:$0xff]  ;;  %vm53_vm0 = vcmask 1043456   ;;  %v314_v1 = vld [vmem:[#allocation7 + $0x8] sm:$0xff]  ;;  %p46_p13 = scmp.gt.s32.totalorder %s380_s1, 0  ;;  %v272_v36 = vmov 839922192   ;;  %v126_v38 = vlaneseq }
  0x23   :  { %v49_v2 = vcombine.high %v312_v0, %v312_v0  ;;  %v67_v3 = vsel %vm53_vm0, %v312_v0, -inf  ;;  %v54_v4 = vsel %vm53_vm0, %v312_v0, inf  ;;  %v50_v5 = vcombine.high %v314_v1, %v314_v1  ;;  %s90_s7 = sld [smem:[#allocation3]]  ;;  %s187_s8 = sld [smem:[#allocation3 + $0x1]] }
  0x24   :  { %v72_v6 = vsel %vm53_vm0, %v314_v1, -inf  ;;  %v59_v7 = vsel %vm53_vm0, %v314_v1, inf  ;;  %s85_s6 = scalar_select %p46_p13, 1, 0  ;;  %v91_v34 = vmax.f32 %v312_v0, 0.0  ;;  %v92_v35 = vmax.f32 %v314_v1, 0.0 }
  0x25   :  { %v68_v8 = vsel %vm53_vm0, %v49_v2, -inf  ;;  %v55_v9 = vsel %vm53_vm0, %v49_v2, inf  ;;  %v73_v10 = vsel %vm53_vm0, %v50_v5, -inf  ;;  %v60_v11 = vsel %vm53_vm0, %v50_v5, inf  ;;  %s345_s9 = sld [smem:[#allocation3 + $0x2]]  ;;  %s189_s18 = sld [smem:[#allocation3 + $0x3]] }
  0x26   :  { %v69_v12 = vmax.f32 %v67_v3, %v68_v8  ;;  %v56_v13 = vmin.f32 %v54_v4, %v55_v9  ;;  %v74_v14 = vmax.f32 %v72_v6, %v73_v10  ;;  %v61_v15 = vmin.f32 %v59_v7, %v60_v11  ;;  %s89_s12 = scalar_select %p46_p13, 0.0, 0.5 }
  0x27   :  { %v86_v27 = vstv %s85_s6  ;;  %v124_v37 = vunpack.c.l.s4 %v272_v36  ;;  %v93_v39 = vmin.f32 %v91_v34, 1.614  ;;  %v94_v40 = vmin.f32 %v92_v35, 1.614  ;;  %s117_s17 = scalar_select %p46_p13, 0.0, -127.0 }
  0x28   :  { %70 = vmax.xlane.f32.xlu1 %v69_v12  ;;  %57 = vmin.xlane.f32.xlu0 %v56_v13  ;;  %vm87_vm1 = vcmp.eq.s32.totalorder %v86_v27, 1  ;;  %v127_v42 = vshrl.u32 %v126_v38, 7  ;;  %v104_v43 = vmin.f32 %v91_v34, 2.775  ;;  %v105_v44 = vmin.f32 %v92_v35, 2.775 }
  0x29   :  { %v125_v41 = vunpack.c.0.s8 %v124_v37  ;;  %v95_v45 = vmul.f32 1.858736, %v93_v39  ;;  %v96_v46 = vmul.f32 1.858736, %v94_v40  ;;  %s99_s13 = smul.f32 0.538, %s90_s7  ;;  %v133_v52 = vstv %s89_s12 }
  0x2a   :  { %v106_v49 = vmul.f32 5.4054055, %v104_v43  ;;  %v107_v50 = vmul.f32 5.4054055, %v105_v44  ;;  %s110_s14 = smul.f32 0.185, %s187_s8  ;;  %v140_v7 = vstv %s117_s17 }
  0x2b   :  { %v128_v47 = vsub.s32 %v125_v41, %v127_v42  ;;  %v190_v55 = vround.rtne.f32 %v95_v45  ;;  %v191_v56 = vround.rtne.f32 %v96_v46  ;;  %v100_v59 = vstv %s99_s13  ;;  %s118_s21 = scalar_select %p46_p13, 255.0, 127.0 }
  0x2c   :  { %75 = vmax.xlane.f32.xlu1 %v74_v14  ;;  %62 = vmin.xlane.f32.xlu0 %v61_v15  ;;  %v192_v57 = vround.rtne.f32 %v106_v49  ;;  %v193_v58 = vround.rtne.f32 %v107_v50  ;;  %v111_v60 = vstv %s110_s14  ;;  %v146_v63 = vstv %s345_s9  ;;  %s273_s1 = smov [#allocation8]  }
  0x2d   :  { %v101_v4 = vmul.f32 %v190_v55, %v100_v59  ;;  %v102_v5 = vmul.f32 %v191_v56, %v100_v59  ;;  %v143_v12 = vstv %s118_s21  ;;  %s174_s22 = sshll.u32 %s273_s1, 4  ;;  %s175_s22 = int_to_ptr.vmem [resolvable:$true] %s174_s22 }
  0x2e   :  { %v112_v6 = vmul.f32 %v192_v57, %v111_v60  ;;  %v113_v8 = vmul.f32 %v193_v58, %v111_v60  ;;  %s240_s23 = scalar_lea.vmem %s175_s22, 256  ;;  %p245_p1 = scmp.lt.s32.totalorder %s175_s22, %s175_s22 }
  0x2f   :  { %p241_p0 = scmp.ne.s32.totalorder %s175_s22, %s240_s23  ;;  %p246_p2 = scmp.lt.s32.totalorder %s240_s23, %s240_s23 }
  0x30   :  { %v114_v15 = vadd.f32 %v112_v6, %v101_v4 }
  0x31   :  { %p247_p3 = por %p246_p2, %p245_p1 }
  0x33   :  { %p248_p4 = pnand %p247_p3, %p241_p0 }
  0xb5   :  { %v71_v16 = vpop.xlane.xlu1 %70  ;;  %v58_v17 = vpop.xlane.xlu0 %57 }
  0xb6   :  { %v77_v20 = vsel %vm53_vm0, %v71_v16, -inf  ;;  %v64_v21 = vsel %vm53_vm0, %v58_v17, inf  ;;  %v162_v16 = vstv %s189_s18  ;;  %v115_v17 = vadd.f32 %v113_v8, %v102_v5 }
  0xb9   :  { %v76_v18 = vpop.xlane.xlu1 %75  ;;  %v63_v19 = vpop.xlane.xlu0 %62 }
  0xba   :  { %v78_v22 = vsel %vm53_vm0, %v76_v18, -inf  ;;  %v65_v23 = vsel %vm53_vm0, %v63_v19, inf }
  0xbb   :  { %v79_v24 = vmax.f32 %v77_v20, %v78_v22  ;;  %v66_v25 = vmin.f32 %v64_v21, %v65_v23  ;;  %v163_v23 = vmul.f32 %v162_v16, %v312_v0 }
  0xbd   :  { %v81_v26 = vand.u32 2147483647, %v79_v24  ;;  %v82_v28 = vand.u32 2147483647, %v66_v25  ;;  %v80_v30 = vsub.f32 %v79_v24, %v66_v25  ;;  %v164_v24 = vmul.f32 %v162_v16, %v314_v1 }
  0xbf   :  { %v83_v29 = vmax.f32.f32 %v81_v26, %v82_v28 }
  0xc1   :  { %v84_v31 = vmul.f32 2.0, %v83_v29 }
  0xc3   :  { %v88_v32 = vsel %vm87_vm1, %v80_v30, %v84_v31 }
  0xc4   :  { %v119_v33 = vmul.f32 0.003921569, %v88_v32 }
  0xc6   :  { %204 = vrcp.f32 %v119_v33  ;;  %v147_v11 = vmul.f32 %v146_v63, %v119_v33 }
  0xc8   :  { %v155_v20 = vrot.slane %v147_v11, %v128_v47 }
  0xd0   :  { %v205_v48 = vpop.eup %204 }
  0xd1   :  { %v129_v51 = vrot.slane %v205_v48, %v128_v47 }
  0xd3   :  { %v131_v53 = vmul.f32 %v129_v51, %v312_v0  ;;  %v132_v54 = vmul.f32 %v129_v51, %v314_v1 }
  0xd5   :  { %v134_v61 = vadd.f32 %v133_v52, %v131_v53  ;;  %v135_v62 = vadd.f32 %v133_v52, %v132_v54 }
  0xd7   :  { %v194_v2 = vround.rtne.f32 %v134_v61  ;;  %v195_v3 = vround.rtne.f32 %v135_v62 }
  0xd9   :  { %v138_v9 = vsub.f32 %v194_v2, %v133_v52  ;;  %v139_v10 = vsub.f32 %v195_v3, %v133_v52 }
  0xdb   :  { %v141_v13 = vmax.f32 %v140_v7, %v138_v9  ;;  %v142_v14 = vmax.f32 %v140_v7, %v139_v10 }
  0xdd   :  { %v144_v18 = vmin.f32 %v143_v12, %v141_v13  ;;  %v145_v19 = vmin.f32 %v143_v12, %v142_v14 }
  0xdf   :  { %v157_v21 = vmul.f32 %v155_v20, %v144_v18  ;;  %v158_v22 = vmul.f32 %v155_v20, %v145_v19 }
  0xe1   :  { %v159_v25 = vadd.f32 %v157_v21, %v114_v15  ;;  %v160_v26 = vadd.f32 %v158_v22, %v115_v17 }
  0xe3   :  { %v165_v27 = vadd.f32 %v163_v23, %v159_v25  ;;  %v166_v28 = vadd.f32 %v164_v24, %v160_v26 }
  0xe5   :  { %167 = vst [vmem:[#allocation8] sm:$0xff] %v165_v27  ;;  %168 = vst [vmem:[#allocation8 + $0x8] sm:$0xff] %v166_v28 }
  0xe6   :  { %251 = shalt.err (!%p248_p4)
}
  0xe7   :  { %s252_s25 = scalar_lea.hbm %s382_s3, 256 }
  0xe8   :  { %p253_p5 = scmp.ne.s32.totalorder %s382_s3, %s252_s25  ;;  %p256_p6 = scmp.lt.u32.totalorder %s252_s25, %s382_s3 }
  0xea   :  { %p258_p7 = pnand %p256_p6, %p253_p5 }
  0xec   :  { %261 = shalt.err (!%p258_p7)
}
  0xed   :  { %180 = dma.vmem_to_hbm [thread:$0]  %s175_s22, 256, %s382_s3, [#allocation5], %s270_s26, %s270_s26, %s271_s27  }
  0xee   :  { %266 = dma.done.wait [#allocation5], 256  }
  0xef   :  { %267 = vsyncadd [#allocation5], 4294967040 }
  0xf0   :  { %184 = vsyncpa [#allocation4], 1 }
  0xf1   :  { %185 = vsyncpa [#allocation5], 1 }
  0xf2   :  { %186 = vsyncpa [#allocation6], 1 }

</bundles_post_ra>
